<compile_context>
chip_gen: v6e
topology: v6e:2x2x1
jax: 0.10.0
libtpu: 0.0.40
codegen_flags: <defaults>
</compile_context>

<pallas_src>
import functools

import jax
import jax.numpy as jnp
from jax import lax
from jax.experimental import pallas as pl
from jax.experimental.pallas import tpu as pltpu

_LANES = 128
_MAX_TILE_ROWS = 8192     # 8192 rows * 128 lanes * 4 B = 4 MiB per f32 input tile
_NUM_SPLITS = 2           # leading "parallel" grid axis (v7x: one per TensorCore)


def _ultra_loss_kernel(pred_ref, target_ref, out_ref, *, rows, tile_rows, tiles_per_split):
    c = pl.program_id(0)          # core / split index   ("parallel")
    j = pl.program_id(1)          # row-tile index       ("arbitrary", reduction)

    @pl.when(j == 0)
    def _init():
        out_ref[...] = jnp.zeros_like(out_ref)

    d = pred_ref[...].astype(jnp.float32) - target_ref[...].astype(jnp.float32)
    sq = d * d

    # Rows of this tile that are inside the real array (rest is OOB garbage to mask).
    valid = rows - (c * tiles_per_split + j) * tile_rows

    def _accum(x):
        # (tile_rows,128) -> (tile_rows//8, 8, 128), sum axis 0: whole-vreg VPU adds,
        # no cross-lane/cross-sublane fold per step.
        out_ref[...] += jnp.sum(x.reshape(-1, 8, _LANES), axis=0)

    @pl.when(valid >= tile_rows)          # full tile: no masking cost
    def _full():
        _accum(sq)

    @pl.when(valid < tile_rows)           # tail tile: mask OOB rows
    def _tail():
        rid = lax.broadcasted_iota(jnp.int32, sq.shape, 0)
        _accum(jnp.where(rid < valid, sq, 0.0))


def ultra_weighted_loss(pred, target, gap_weight=50.0):
    """JAX/Pallas equivalent of UltraWeightedLoss.forward(pred, target)."""
    assert pred.shape == target.shape and pred.ndim == 2 and pred.shape[1] == 2
    assert pred.dtype == target.dtype
    b = pred.shape[0]
    n = 2 * b

    itemsize = jnp.dtype(pred.dtype).itemsize
    sub = max(8, 32 // itemsize)              # sublane granularity (f32:8, bf16:16, int8:32)
    rows = pl.cdiv(n, _LANES)

    # Tiny batches: pallas_call launch/DMA setup dominates; fused XLA reduce is faster.
    if rows < 4 * sub * _NUM_SPLITS:
        d = pred.astype(jnp.float32) - target.astype(jnp.float32)
        sq = d * d
        return jnp.mean(sq[:, 0]) + gap_weight * jnp.mean(sq[:, 1])

    # Near-exact tiling: minimize padded / out-of-bounds rows instead of forcing MAX.
    tiles_needed = pl.cdiv(rows, _MAX_TILE_ROWS)
    total_tiles = _NUM_SPLITS * pl.cdiv(tiles_needed, _NUM_SPLITS)
    tile_rows = sub * pl.cdiv(pl.cdiv(rows, total_tiles), sub)
    tiles_per_split = total_tiles // _NUM_SPLITS

    def _lane_view(x):
        x = x.reshape(-1)                     # row-major flatten: free bitcast-style reshape
        pad = (-n) % _LANES
        if pad:
            # TODO(synk): for 2*B % 128 != 0 this jnp.pad materializes one extra copy of the
            # input in HBM; a manual-DMA (memory_space=pl.ANY) tail path would avoid it.
            x = jnp.pad(x, (0, pad))
        return x.reshape(rows, _LANES)        # lane parity == column (L / gap)

    pred_d = _lane_view(pred)
    target_d = _lane_view(target)

    kernel = functools.partial(
        _ultra_loss_kernel, rows=rows, tile_rows=tile_rows, tiles_per_split=tiles_per_split)

    per_sublane = pl.pallas_call(
        kernel,
        out_shape=jax.ShapeDtypeStruct((_NUM_SPLITS * 8, _LANES), jnp.float32),
        grid=(_NUM_SPLITS, tiles_per_split),
        in_specs=[
            pl.BlockSpec((tile_rows, _LANES), lambda c, j: (c * tiles_per_split + j, 0)),
            pl.BlockSpec((tile_rows, _LANES), lambda c, j: (c * tiles_per_split + j, 0)),
        ],
        # One (8,128) accumulator block per split, resident across the reduction axis.
        out_specs=pl.BlockSpec((8, _LANES), lambda c, j: (c, 0)),
        compiler_params=pltpu.CompilerParams(
            dimension_semantics=("parallel", "arbitrary"),
            vmem_limit_bytes=32 * 1024 * 1024,    # 2 inputs x 2 buffers x 4 MiB = 16 MiB + slack
        ),
        cost_estimate=pl.CostEstimate(
            flops=3 * rows * _LANES,
            transcendentals=0,
            bytes_accessed=2 * rows * _LANES * itemsize + _NUM_SPLITS * 8 * _LANES * 4,
        ),
    )(pred_d, target_d)

    # Final tiny reduce + per-column weighting in the wrapper (works even if gap_weight is traced).
    lane_scale = (jnp.where(jnp.arange(_LANES) % 2 == 0, 1.0, gap_weight) / b).astype(jnp.float32)
    return jnp.sum(jnp.sum(per_sublane, axis=0) * lane_scale)


def _reference(pred, target, gap_weight=50.0):
    mse_L = jnp.mean((pred[:, 0] - target[:, 0]) ** 2)
    mse_gap = jnp.mean((pred[:, 1] - target[:, 1]) ** 2)
    return mse_L + gap_weight * mse_gap


if __name__ == "__main__":
    key = jax.random.PRNGKey(0)
    gap_weight = 50.0

    # (B, rtol): B=8 matches the module's tiny-batch usage (jnp fast path);
    # B=12_345 exercises lane padding + tail-row masking; B=1_200_000 exercises the
    # copy-free aligned path, multi-step accumulation and the 2-way split.
    cases = [(8, 1e-5), (12_345, 1e-3), (1_200_000, 1e-3)]
    for bsz, rtol in cases:
        key, k1, k2 = jax.random.split(key, 3)
        pred = jax.random.normal(k1, (bsz, 2), dtype=jnp.float32)
        target = jax.random.normal(k2, (bsz, 2), dtype=jnp.float32)

        loss = ultra_weighted_loss(pred, target, gap_weight=gap_weight)
        jax.block_until_ready(loss)
        ref = _reference(pred, target, gap_weight=gap_weight)
        assert jnp.allclose(loss, ref, rtol=rtol, atol=1e-5), (bsz, loss, ref)

    print("KERNEL_OK")
</pallas_src>

<mosaic_0001>
module attributes {stable_mosaic.version = 11 : i64} {
  func.func @_ultra_loss_kernel(%arg0: i32, %arg1: i32, %arg2: memref<104x128xf32, #tpu.memory_space<vmem>>, %arg3: memref<104x128xf32, #tpu.memory_space<vmem>>, %arg4: memref<8x128xf32, #tpu.memory_space<vmem>>) attributes {dimension_semantics = [#tpu.dimension_semantics<parallel>, #tpu.dimension_semantics<arbitrary>], iteration_bounds = array<i64: 2, 1>, scalar_prefetch = 0 : i64, scratch_operands = 0 : i64, tpu.core_type = #tpu.core_type<tc>, window_params = [{transform_indices = @transform_0, window_bounds = array<i64: 104, 128>}, {transform_indices = @transform_1, window_bounds = array<i64: 104, 128>}, {transform_indices = @transform_2, window_bounds = array<i64: 8, 128>}]} {
    %c0_i32 = arith.constant 0 : i32
    %0 = arith.cmpi eq, %arg1, %c0_i32 : i32
    %1 = arith.extui %0 : i1 to i32
    %c0_i32_0 = arith.constant 0 : i32
    %2 = arith.cmpi ne, %1, %c0_i32_0 : i32
    scf.if %2 {
      %cst = arith.constant 0.000000e+00 : f32
      %17 = vector.broadcast %cst : f32 to vector<8x128xf32>
      %c0_8 = arith.constant 0 : index
      %c0_9 = arith.constant 0 : index
      %18 = vector.load %arg4[%c0_8, %c0_9] : memref<8x128xf32, #tpu.memory_space<vmem>>, vector<8x128xf32>
      tpu.vector_store %arg4[%c0_8, %c0_9], %17 {strides = array<i32>} : memref<8x128xf32, #tpu.memory_space<vmem>>, vector<8x128xf32>,
    } else {
    }
    %c0 = arith.constant 0 : index
    %c0_1 = arith.constant 0 : index
    %3 = vector.load %arg2[%c0, %c0_1] : memref<104x128xf32, #tpu.memory_space<vmem>>, vector<104x128xf32>
    %c0_2 = arith.constant 0 : index
    %c0_3 = arith.constant 0 : index
    %4 = vector.load %arg3[%c0_2, %c0_3] : memref<104x128xf32, #tpu.memory_space<vmem>>, vector<104x128xf32>
    %5 = arith.subf %3, %4 : vector<104x128xf32>
    %6 = arith.mulf %5, %5 : vector<104x128xf32>
    %c1_i32 = arith.constant 1 : i32
    %7 = arith.muli %arg0, %c1_i32 : i32
    %8 = arith.addi %7, %arg1 : i32
    %c104_i32 = arith.constant 104 : i32
    %9 = arith.muli %8, %c104_i32 : i32
    %c193_i32 = arith.constant 193 : i32
    %10 = arith.subi %c193_i32, %9 : i32
    %c104_i32_4 = arith.constant 104 : i32
    %11 = arith.cmpi sge, %10, %c104_i32_4 : i32
    %12 = arith.extui %11 : i1 to i32
    %c0_i32_5 = arith.constant 0 : i32
    %13 = arith.cmpi ne, %12, %c0_i32_5 : i32
    scf.if %13 {
      %c0_8 = arith.constant 0 : index
      %c0_9 = arith.constant 0 : index
      %17 = vector.load %arg4[%c0_8, %c0_9] : memref<8x128xf32, #tpu.memory_space<vmem>>, vector<8x128xf32>
      %18 = vector.shape_cast %6 : vector<104x128xf32> to vector<13x8x128xf32>
      %cst = arith.constant dense<0.000000e+00> : vector<8x128xf32>
      %19 = vector.multi_reduction <add>, %18, %cst [0] : vector<13x8x128xf32> to vector<8x128xf32>
      %20 = arith.addf %17, %19 : vector<8x128xf32>
      %c0_10 = arith.constant 0 : index
      %c0_11 = arith.constant 0 : index
      %21 = vector.load %arg4[%c0_10, %c0_11] : memref<8x128xf32, #tpu.memory_space<vmem>>, vector<8x128xf32>
      tpu.vector_store %arg4[%c0_10, %c0_11], %20 {strides = array<i32>} : memref<8x128xf32, #tpu.memory_space<vmem>>, vector<8x128xf32>,
    } else {
    }
    %c104_i32_6 = arith.constant 104 : i32
    %14 = arith.cmpi slt, %10, %c104_i32_6 : i32
    %15 = arith.extui %14 : i1 to i32
    %c0_i32_7 = arith.constant 0 : i32
    %16 = arith.cmpi ne, %15, %c0_i32_7 : i32
    scf.if %16 {
      %17 = tpu.iota {dimensions = array<i32: 0>} : vector<104x128xi32>
      %18 = vector.broadcast %10 : i32 to vector<104x128xi32>
      %19 = arith.cmpi slt, %17, %18 : vector<104x128xi32>
      %cst = arith.constant 0.000000e+00 : f32
      %20 = vector.broadcast %cst : f32 to vector<104x128xf32>
      %21 = arith.select %19, %6, %20 : vector<104x128xi1>, vector<104x128xf32>
      %c0_8 = arith.constant 0 : index
      %c0_9 = arith.constant 0 : index
      %22 = vector.load %arg4[%c0_8, %c0_9] : memref<8x128xf32, #tpu.memory_space<vmem>>, vector<8x128xf32>
      %23 = vector.shape_cast %21 : vector<104x128xf32> to vector<13x8x128xf32>
      %cst_10 = arith.constant dense<0.000000e+00> : vector<8x128xf32>
      %24 = vector.multi_reduction <add>, %23, %cst_10 [0] : vector<13x8x128xf32> to vector<8x128xf32>
      %25 = arith.addf %22, %24 : vector<8x128xf32>
      %c0_11 = arith.constant 0 : index
      %c0_12 = arith.constant 0 : index
      %26 = vector.load %arg4[%c0_11, %c0_12] : memref<8x128xf32, #tpu.memory_space<vmem>>, vector<8x128xf32>
      tpu.vector_store %arg4[%c0_11, %c0_12], %25 {strides = array<i32>} : memref<8x128xf32, #tpu.memory_space<vmem>>, vector<8x128xf32>,
    } else {
    }
    return
  }
  func.func @transform_0(%arg0: i32, %arg1: i32) -> (i32, i32) {
    %c1_i32 = arith.constant 1 : i32
    %0 = arith.muli %arg0, %c1_i32 : i32
    %1 = arith.addi %0, %arg1 : i32
    %c0_i32 = arith.constant 0 : i32
    %c0_i32_0 = arith.constant 0 : i32
    return %1, %c0_i32 : i32, i32
  }
  func.func @transform_1(%arg0: i32, %arg1: i32) -> (i32, i32) {
    %c1_i32 = arith.constant 1 : i32
    %0 = arith.muli %arg0, %c1_i32 : i32
    %1 = arith.addi %0, %arg1 : i32
    %c0_i32 = arith.constant 0 : i32
    %c0_i32_0 = arith.constant 0 : i32
    return %1, %c0_i32 : i32, i32
  }
  func.func @transform_2(%arg0: i32, %arg1: i32) -> (i32, i32) {
    %c0_i32 = arith.constant 0 : i32
    %c0_i32_0 = arith.constant 0 : i32
    return %arg0, %c0_i32 : i32, i32
  }
}

</mosaic_0001>

<bundles_post_ra>
// kernel: tpu_custom_call.1
= control target key start
LH: loop header
LB: loop body
LE: loop exit
PB: predicated region body
PF: predicated region fallthrough
CT: control target
= control target key end

     0   :  { %7 = vsyncpa [#allocation3], 0  ;;  %s999_s0 = inlined_call_operand.hbm [shape: f32[193,128], index: 0, kind: input, shape index: {}]   ;;  %s1000_s1 = inlined_call_operand.hbm [shape: f32[193,128], index: 1, kind: input, shape index: {}]   ;;  %s1001_s2 = inlined_call_operand.hbm [shape: f32[16,128], index: 2, kind: output, shape index: {}]  }
   0x1   :  { %9 = vsyncpa [#allocation3 + $0x1], 0 }
   0x2   :  { %10 = vsyncpa [#allocation6], 0 }
   0x3   :  { %12 = vsyncpa [#allocation6 + $0x1], 0 }
   0x4   :  { %13 = vsyncpa [#allocation4], 0 }
   0x5   :  { %15 = vsyncpa [#allocation4 + $0x1], 0  ;;  %s750_s9 = smov 0   ;;  %s752_s10 = smov 0  }
   0x6   :  { %s754_s11 = smov 0   ;;  %s756_s12 = smov 0  }
   0x7   :  { %s758_s13 = smov 0   ;;  %s760_s14 = smov 0  }
   0x8 LB: > { %s500_s15 = sadd.s32 4294967295, %s725_s14   ;;  %s501_s16 = sadd.s32 4294967294, %s725_s14   ;;  %s725_s14 = sphi %s760_s14, %s21_s14   ;;  %s721_s13 = sphi %s758_s13, %s1013_s13   ;;  %s717_s12 = sphi %s756_s12, %s1012_s12   ;;  %s713_s11 = sphi %s754_s11, %s1011_s11   ;;  %s709_s10 = sphi %s752_s10, %s1010_s10   ;;  %s705_s9 = sphi %s750_s9, %s1009_s9  }
   0x9   : > { %s33_s17 = sadd.s32 1, %s721_s13  ;;  %s42_s18 = sadd.s32 1, %s713_s11 }
   0xa   : > { %p35_p0 = scmp.ge.s32.totalorder %s33_s17, 2  ;;  %p49_p1 = scmp.ne.s32.totalorder %s713_s11, %s709_s10 }
   0xb   : > { %p50_p2 = scmp.eq.s32.totalorder %s725_s14, 0  ;;  %p55_p3 = scmp.ne.s32.totalorder %s709_s10, %s705_s9 }
   0xc   : > { %s1015_s17 = smov (%p35_p0, %s33_s17), 0  ;;  %p56_p5 = scmp.eq.s32.totalorder %s500_s15, 0 }
   0xd   : > { %p791_p4 = por %p50_p2, %p49_p1  ;;  %s39_s20 = ssub.s32 %s721_s13, %s1015_s17 }
   0xe   : > { %p107_p6 = scmp.eq.s32.totalorder %s500_s15, 1  ;;  %p40_p7 = scmp.eq.s32.totalorder %s39_s20, 0 }
   0xf   : > { %p797_p8 = por %p56_p5, %p55_p3  ;;  %p113_p10 = scmp.eq.s32.totalorder %s501_s16, 1 }
  0x10   : > { %p801_p9 = por %p107_p6, %p49_p1  ;;  %p1002_p12 = scmp.ge.s32.totalorder %s725_s14, 2 }
  0x11   : > { %s806_s23 = scalar_select %p40_p7, %s713_s11, %s42_s18  }
  0x12   : > { %p808_p11 = por %p113_p10, %p55_p3  ;;  %129 = sbr.rel (%p1002_p12) target bundleno = 91 (0x5b), region = 16 }
  0x14   : > { %s1006_s24 = scalar_select %p808_p11, 1, 0 }
  0x17   : > { %132 = sbr.rel (!%p791_p4) target bundleno = 57 (0x39), region = 20  ;;  %s133_s25 = sand.u32 (%p791_p4), 1, %s713_s11  }
  0x18   : > { %s139_s26 = smul.u32 (%p791_p4), 13, %s721_s13  ;;  %s822_s3 = scalar_lea.sflag (%p791_p4), [#allocation3], %s133_s25 }
  0x19   : > { %s524_s27 = smul.u32 (%p791_p4), 104, %s133_s25 }
  0x1a   : > { %s140_s28 = ssub.s32 (%p791_p4), 25, %s139_s26 }
  0x1b   : > { %p141_p13 = scmp.lt.s32.totalorder (%p791_p4), %s140_s28, 13  ;;  %s137_s4 = scalar_lea.vmem (%p791_p4), [#allocation2], %s524_s27 }
  0x1d   : > { %s1017_s28 = smov (!%p141_p13, %s140_s28), 13 }
  0x1e   : > { %s819_s29 = sshll.u32 %s1017_s28, 7 }
  0x1f   : > { %s145_s30 = ssub.s32 1664, %s819_s29 }
  0x20   : > { %146 = vsyncadd %s822_s3, %s145_s30  ;;  %p505_p0 = scmp.ne.s32.totalorder %s819_s29, 0  ;;  %s522_s5 = smul.u32 1664, %s721_s13 }
  0x21   : > { %s151_s6 = sshll.u32 %s137_s4, 4  ;;  %s593_s25 = scalar_lea.hbm %s999_s0, 3200  ;;  %s832_s6 = int_to_ptr.vmem [resolvable:$true] %s151_s6 }
  0x22   : > { %s830_s15 = scalar_lea.hbm %s999_s0, %s522_s5 }
  0x23   : > { %s589_s16 = scalar_lea.hbm %s830_s15, %s819_s29 }
  0x24   : > { %p590_p1 = scmp.ne.s32.totalorder %s830_s15, %s589_s16  ;;  %p595_p5 = scmp.lt.s32.totalorder %s593_s25, %s589_s16 }
  0x26   : > { %p591_p2 = pnand %p590_p1, %p505_p0 }
  0x28   : > { %p592_p3 = pneg %p591_p2 }
  0x2a   : > { %p597_p6 = pnand %p595_p5, %p592_p3 }
  0x2c   : > { %600 = shalt.err (!%p597_p6)
}
  0x2d   : > { %s601_s26 = scalar_lea.vmem %s832_s6, %s819_s29  ;;  %s727_s27 = smov [#allocation2]  }
  0x2e   : > { %p602_p7 = scmp.ne.s32.totalorder %s832_s6, %s601_s26  ;;  %s605_s28 = sshll.u32 %s727_s27, 4  ;;  %s606_s28 = int_to_ptr.vmem [resolvable:$false] %s605_s28 }
  0x2f   : > { %s607_s30 = scalar_lea.vmem %s606_s28, 3328  ;;  %p608_p1 = scmp.lt.s32.totalorder %s832_s6, %s606_s28 }
  0x30   : > { %p603_p10 = pnand %p602_p7, %p505_p0  ;;  %p609_p2 = scmp.lt.s32.totalorder %s607_s30, %s601_s26 }
  0x32   : > { %p604_p13 = pneg %p603_p10  ;;  %p610_p12 = por %p609_p2, %p608_p1 }
  0x34   : > { %p611_p11 = pnand %p610_p12, %p604_p13 }
  0x36   : > { %614 = shalt.err (!%p611_p11)
}
  0x37   : > { %s728_s4 = smov 128   ;;  %s729_s5 = smov 8  }
  0x38   : > { %157 = dma.hbm_to_vmem [thread:$0]  (%p505_p0), %s830_s15, %s819_s29, %s832_s6, %s822_s3, %s728_s4, %s728_s4, %s729_s5  }
  0x39 PF: > { %160 = sbr.rel (!%p791_p4) target bundleno = 91 (0x5b), region = 24  ;;  %s161_s7 = sand.u32 (%p791_p4), 1, %s713_s11  }
  0x3a   : > { %s167_s8 = smul.u32 (%p791_p4), 13, %s721_s13  ;;  %s861_s26 = scalar_lea.sflag (%p791_p4), [#allocation6], %s161_s7 }
  0x3b   : > { %s525_s16 = smul.u32 (%p791_p4), 104, %s161_s7 }
  0x3c   : > { %s168_s18 = ssub.s32 (%p791_p4), 25, %s167_s8 }
  0x3d   : > { %p169_p11 = scmp.lt.s32.totalorder (%p791_p4), %s168_s18, 13  ;;  %s165_s29 = scalar_lea.vmem (%p791_p4), [#allocation5], %s525_s16 }
  0x3f   : > { %s1019_s18 = smov (!%p169_p11, %s168_s18), 13 }
  0x40   : > { %s858_s20 = sshll.u32 %s1019_s18, 7 }
  0x41   : > { %s173_s25 = ssub.s32 1664, %s858_s20 }
  0x42   : > { %174 = vsyncadd %s861_s26, %s173_s25  ;;  %p510_p4 = scmp.ne.s32.totalorder %s858_s20, 0  ;;  %s523_s19 = smul.u32 1664, %s721_s13 }
  0x43   : > { %s179_s3 = sshll.u32 %s165_s29, 4  ;;  %s619_s5 = scalar_lea.hbm %s1000_s1, 3200  ;;  %s871_s3 = int_to_ptr.vmem [resolvable:$true] %s179_s3 }
  0x44   : > { %s869_s27 = scalar_lea.hbm %s1000_s1, %s523_s19 }
  0x45   : > { %s615_s28 = scalar_lea.hbm %s869_s27, %s858_s20 }
  0x46   : > { %p616_p12 = scmp.ne.s32.totalorder %s869_s27, %s615_s28  ;;  %p621_p5 = scmp.lt.s32.totalorder %s619_s5, %s615_s28 }
  0x48   : > { %p617_p0 = pnand %p616_p12, %p510_p4 }
  0x4a   : > { %p618_p3 = pneg %p617_p0 }
  0x4c   : > { %p623_p6 = pnand %p621_p5, %p618_p3 }
  0x4e   : > { %626 = shalt.err (!%p623_p6)
}
  0x4f   : > { %s627_s7 = scalar_lea.vmem %s871_s3, %s858_s20  ;;  %s730_s8 = smov [#allocation5]  }
  0x50   : > { %p628_p7 = scmp.ne.s32.totalorder %s871_s3, %s627_s7  ;;  %s631_s16 = sshll.u32 %s730_s8, 4  ;;  %s632_s16 = int_to_ptr.vmem [resolvable:$false] %s631_s16 }
  0x51   : > { %s633_s18 = scalar_lea.vmem %s632_s16, 3328  ;;  %p634_p1 = scmp.lt.s32.totalorder %s871_s3, %s632_s16 }
  0x52   : > { %p629_p10 = pnand %p628_p7, %p510_p4  ;;  %p635_p2 = scmp.lt.s32.totalorder %s633_s18, %s627_s7 }
  0x54   : > { %p630_p13 = pneg %p629_p10  ;;  %p636_p11 = por %p635_p2, %p634_p1 }
  0x56   : > { %p637_p12 = pnand %p636_p11, %p630_p13 }
  0x58   : > { %640 = shalt.err (!%p637_p12)
}
  0x59   : > { %s731_s25 = smov 128   ;;  %s732_s29 = smov 8  }
  0x5a   : > { %185 = dma.hbm_to_vmem [thread:$0]  (%p510_p4), %s869_s27, %s858_s20, %s871_s3, %s861_s26, %s731_s25, %s731_s25, %s732_s29  }
  0x5b PF: > { %p514_p0 = scmp.ge.s32.totalorder %s725_s14, 1  ;;  %p187_p3 = scmp.lt.s32.totalorder %s725_s14, 3 }
  0x5d   : > { %p188_p5 = pnand %p514_p0, %p187_p3 }
  0x5e   : > { %s896_s19 = sand.u32 (!%p188_p5), 1, %s709_s10  }
  0x5f   : > { %191 = sbr.rel (%p188_p5) target bundleno = 208 (0xd0), region = 28  ;;  %s194_s15 = scalar_lea.sflag (!%p188_p5), [#allocation3], %s896_s19 }
  0x60   : > { %s526_s6 = smul.u32 (!%p188_p5), 104, %s896_s19 }
  0x62   : > { %s197_s28 = scalar_lea.vmem (!%p188_p5), [#allocation2], %s526_s6 }
  0x64   : > { %692 = dma.done.wait (%p797_p8), %s194_s15, 1664  }
  0x65   : > { %694 = vsyncadd (%p797_p8), %s194_s15, 4294965632  ;;  %s203_s20 = scalar_lea.sflag [#allocation6], %s896_s19  ;;  %s905_s26 = scalar_lea.vmem [#allocation5], %s526_s6 }
  0x66   : > { %696 = dma.done.wait (%p797_p8), %s203_s20, 1664  }
  0x67   : > { %698 = vsyncadd (%p797_p8), %s203_s20, 4294965632  ;;  %s515_s3 = sshll.u32 %s896_s19, 3  ;;  %s302_s27 = smul.u32 104, %s717_s12  ;;  %v733_v0 = vmov 0.0   ;;  %v249_v1 = vld [vmem:[%s197_s28] sm:$0xff]  ;;  %v250_v2 = vld [vmem:[%s197_s28 + $0x8] sm:$0xff] }
  0x68   : > { %s913_s30 = scalar_lea.vmem [#allocation7], %s515_s3  ;;  %v251_v3 = vld [vmem:[%s197_s28 + $0x10] sm:$0xff]  ;;  %v252_v4 = vld [vmem:[%s197_s28 + $0x18] sm:$0xff]  ;;  %v253_v5 = vld [vmem:[%s197_s28 + $0x20] sm:$0xff] }
  0x69   : > { %248 = vst [vmem:[%s913_s30] sm:$0xff] %v733_v0  ;;  %s916_s4 = ssub.s32 193, %s302_s27  ;;  %v254_v6 = vld [vmem:[%s197_s28 + $0x28] sm:$0xff]  ;;  %v255_v7 = vld [vmem:[%s197_s28 + $0x30] sm:$0xff]  ;;  %v256_v8 = vld [vmem:[%s197_s28 + $0x38] sm:$0xff] }
  0x6a   : > { %v257_v9 = vld [vmem:[%s197_s28 + $0x40] sm:$0xff]  ;;  %v258_v10 = vld [vmem:[%s197_s28 + $0x48] sm:$0xff]  ;;  %v259_v11 = vld [vmem:[%s197_s28 + $0x50] sm:$0xff]  ;;  %p516_p8 = scmp.lt.s32.totalorder %s916_s4, 104 }
  0x6b   : > { %v260_v12 = vld [vmem:[%s197_s28 + $0x58] sm:$0xff]  ;;  %v261_v13 = vld [vmem:[%s197_s28 + $0x60] sm:$0xff]  ;;  %v262_v14 = vld [vmem:[%s905_s26] sm:$0xff] }
  0x6c   : > { %v263_v15 = vld [vmem:[%s905_s26 + $0x8] sm:$0xff]  ;;  %v264_v16 = vld [vmem:[%s905_s26 + $0x10] sm:$0xff]  ;;  %v265_v17 = vld [vmem:[%s905_s26 + $0x18] sm:$0xff]  ;;  %v275_v19 = vsub.f32 %v249_v1, %v262_v14 }
  0x6d   : > { %v266_v18 = vld [vmem:[%s905_s26 + $0x20] sm:$0xff]  ;;  %v276_v20 = vsub.f32 %v250_v2, %v263_v15  ;;  %v267_v21 = vld [vmem:[%s905_s26 + $0x28] sm:$0xff]  ;;  %v268_v22 = vld [vmem:[%s905_s26 + $0x30] sm:$0xff]  ;;  %v277_v24 = vsub.f32 %v251_v3, %v264_v16  ;;  %v278_v25 = vsub.f32 %v252_v4, %v265_v17 }
  0x6e   : > { %v269_v23 = vld [vmem:[%s905_s26 + $0x38] sm:$0xff]  ;;  %v279_v26 = vsub.f32 %v253_v5, %v266_v18  ;;  %v270_v27 = vld [vmem:[%s905_s26 + $0x40] sm:$0xff]  ;;  %v271_v28 = vld [vmem:[%s905_s26 + $0x48] sm:$0xff]  ;;  %v280_v30 = vsub.f32 %v254_v6, %v267_v21  ;;  %v281_v31 = vsub.f32 %v255_v7, %v268_v22  ;;  %v288_v33 = vmul.f32 %v275_v19, %v275_v19 }
  0x6f   : > { %v272_v29 = vld [vmem:[%s905_s26 + $0x50] sm:$0xff]  ;;  %v282_v32 = vsub.f32 %v256_v8, %v269_v23  ;;  %v273_v34 = vld [vmem:[%s905_s26 + $0x58] sm:$0xff]  ;;  %v274_v35 = vld [vmem:[%s905_s26 + $0x60] sm:$0xff]  ;;  %v283_v36 = vsub.f32 %v257_v9, %v270_v27  ;;  %v284_v37 = vsub.f32 %v258_v10, %v271_v28  ;;  %v289_v39 = vmul.f32 %v276_v20, %v276_v20  ;;  %307 = sbr.rel (%p516_p8) target bundleno = 143 (0x8f), region = 44 }
  0x70   : > { %v285_v38 = vsub.f32 %v259_v11, %v272_v29  ;;  %v286_v40 = vsub.f32 %v260_v12, %v273_v34  ;;  %v287_v41 = vsub.f32 %v261_v13, %v274_v35  ;;  %v290_v42 = vmul.f32 %v277_v24, %v277_v24 }
  0x71   : > { %v291_v43 = vmul.f32 %v278_v25, %v278_v25  ;;  %v292_v44 = vmul.f32 %v279_v26, %v279_v26  ;;  %v293_v45 = vmul.f32 %v280_v30, %v280_v30  ;;  %v294_v46 = vmul.f32 %v281_v31, %v281_v31 }
  0x72   : > { %v295_v47 = vmul.f32 %v282_v32, %v282_v32  ;;  %v931_v48 = vmul.f32 %v283_v36, %v283_v36  ;;  %v933_v49 = vmul.f32 %v284_v37, %v284_v37  ;;  %v935_v50 = vmul.f32 %v285_v38, %v285_v38 }
  0x73   : > { %v937_v51 = vmul.f32 %v286_v40, %v286_v40  ;;  %v939_v52 = vmul.f32 %v287_v41, %v287_v41 }
  0x74   : > { %v309_v53 = vadd.f32 %v289_v39, %v288_v33  ;;  %v308_v0 = vld [vmem:[%s913_s30] sm:$0xff] }
  0x76   : > { %v310_v54 = vadd.f32 %v309_v53, %v290_v42 }
  0x78   : > { %v311_v55 = vadd.f32 %v310_v54, %v291_v43 }
  0x7a   : > { %v312_v56 = vadd.f32 %v311_v55, %v292_v44 }
  0x7c   : > { %v313_v57 = vadd.f32 %v312_v56, %v293_v45 }
  0x7e   : > { %v314_v58 = vadd.f32 %v313_v57, %v294_v46 }
  0x80   : > { %v315_v59 = vadd.f32 %v314_v58, %v295_v47 }
  0x82   : > { %v316_v60 = vadd.f32 %v315_v59, %v931_v48 }
  0x84   : > { %v317_v61 = vadd.f32 %v316_v60, %v933_v49 }
  0x86   : > { %v318_v62 = vadd.f32 %v317_v61, %v935_v50 }
  0x88   : > { %v319_v63 = vadd.f32 %v318_v62, %v937_v51 }
  0x8a   : > { %v320_v1 = vadd.f32 %v319_v63, %v939_v52 }
  0x8c   : > { %v321_v2 = vadd.f32 %v320_v1, %v308_v0 }
  0x8e   : > { %322 = vst [vmem:[%s913_s30] sm:$0xff] %v321_v2 }
  0x8f PF: > { %p517_p4 = scmp.ge.s32.totalorder %s916_s4, 104 }
  0x91   : > { %326 = sbr.rel (%p517_p4) target bundleno = 185 (0xb9), region = 48 }
  0x96   : > { %v327_v3 = vlaneseq  ;;  %v341_v6 = vstv %s916_s4 }
  0x98   : > { %v328_v4 = vshrl.u32 %v327_v3, 7 }
  0x9a   : > { %v329_v5 = vadd.s32 8, %v328_v4  ;;  %v330_v7 = vadd.s32 16, %v328_v4  ;;  %v331_v8 = vadd.s32 24, %v328_v4  ;;  %vm342_vm0 = vcmp.lt.s32.totalorder %v328_v4, %v341_v6 }
  0x9b   : > { %v332_v9 = vadd.s32 32, %v328_v4  ;;  %v355_v10 = vsel %vm342_vm0, %v288_v33, 0.0  ;;  %v333_v12 = vadd.s32 40, %v328_v4  ;;  %v334_v14 = vadd.s32 48, %v328_v4 }
  0x9c   : > { %vm343_vm1 = vcmp.lt.s32.totalorder %v329_v5, %v341_v6  ;;  %vm344_vm2 = vcmp.lt.s32.totalorder %v330_v7, %v341_v6  ;;  %vm345_vm3 = vcmp.lt.s32.totalorder %v331_v8, %v341_v6  ;;  %v335_v17 = vadd.s32 56, %v328_v4 }
  0x9d   : > { %v356_v11 = vsel %vm343_vm1, %v289_v39, 0.0  ;;  %v357_v13 = vsel %vm344_vm2, %v290_v42, 0.0  ;;  %vm346_vm4 = vcmp.lt.s32.totalorder %v332_v9, %v341_v6  ;;  %v358_v16 = vsel %vm345_vm3, %v291_v43, 0.0  ;;  %v368_v42 = vld [vmem:[%s913_s30] sm:$0xff] }
  0x9e   : > { %v369_v15 = vadd.f32 %v356_v11, %v355_v10  ;;  %vm347_vm5 = vcmp.lt.s32.totalorder %v333_v12, %v341_v6  ;;  %v359_v19 = vsel %vm346_vm4, %v292_v44, 0.0  ;;  %v336_v20 = vadd.s32 64, %v328_v4 }
  0x9f   : > { %vm348_vm6 = vcmp.lt.s32.totalorder %v334_v14, %v341_v6  ;;  %v360_v22 = vsel %vm347_vm5, %v293_v45, 0.0  ;;  %v337_v23 = vadd.s32 72, %v328_v4  ;;  %vm349_vm7 = vcmp.lt.s32.totalorder %v335_v17, %v341_v6 }
  0xa0   : > { %v370_v18 = vadd.f32 %v369_v15, %v357_v13  ;;  %v361_v25 = vsel %vm348_vm6, %v294_v46, 0.0  ;;  %v338_v26 = vadd.s32 80, %v328_v4  ;;  %vm350_vm8 = vcmp.lt.s32.totalorder %v336_v20, %v341_v6 }
  0xa1   : > { %v362_v28 = vsel %vm349_vm7, %v295_v47, 0.0  ;;  %v339_v29 = vadd.s32 88, %v328_v4  ;;  %vm351_vm9 = vcmp.lt.s32.totalorder %v337_v23, %v341_v6  ;;  %v363_v31 = vsel %vm350_vm8, %v931_v48, 0.0 }
  0xa2   : > { %v371_v21 = vadd.f32 %v370_v18, %v358_v16  ;;  %v340_v32 = vadd.s32 96, %v328_v4  ;;  %vm352_vm10 = vcmp.lt.s32.totalorder %v338_v26, %v341_v6  ;;  %v364_v34 = vsel %vm351_vm9, %v933_v49, 0.0 }
  0xa3   : > { %vm353_vm11 = vcmp.lt.s32.totalorder %v339_v29, %v341_v6  ;;  %v365_v36 = vsel %vm352_vm10, %v935_v50, 0.0 }
  0xa4   : > { %v372_v24 = vadd.f32 %v371_v21, %v359_v19  ;;  %vm354_vm12 = vcmp.lt.s32.totalorder %v340_v32, %v341_v6  ;;  %v366_v38 = vsel %vm353_vm11, %v937_v51, 0.0 }
  0xa5   : > { %v367_v40 = vsel %vm354_vm12, %v939_v52, 0.0 }
  0xa6   : > { %v373_v27 = vadd.f32 %v372_v24, %v360_v22 }
  0xa8   : > { %v374_v30 = vadd.f32 %v373_v27, %v361_v25 }
  0xaa   : > { %v375_v33 = vadd.f32 %v374_v30, %v362_v28 }
  0xac   : > { %v376_v35 = vadd.f32 %v375_v33, %v363_v31 }
  0xae   : > { %v377_v37 = vadd.f32 %v376_v35, %v364_v34 }
  0xb0   : > { %v378_v39 = vadd.f32 %v377_v37, %v365_v36 }
  0xb2   : > { %v379_v41 = vadd.f32 %v378_v39, %v366_v38 }
  0xb4   : > { %v380_v43 = vadd.f32 %v379_v41, %v367_v40 }
  0xb6   : > { %v381_v44 = vadd.f32 %v380_v43, %v368_v42 }
  0xb8   : > { %382 = vst [vmem:[%s913_s30] sm:$0xff] %v381_v44 }
  0xb9 PF: > { %s519_s21 = sshll.u32 %s717_s12, 7  ;;  %s397_s16 = sshll.u32 %s913_s30, 4  ;;  %s398_s16 = int_to_ptr.vmem [resolvable:$true] %s397_s16 }
  0xba   : > { %s395_s8 = scalar_lea.hbm %s1001_s2, %s519_s21  ;;  %s384_s18 = scalar_lea.sflag [#allocation4], %s896_s19 }
  0xbb   : > { %s641_s25 = scalar_lea.vmem %s398_s16, 128  ;;  %s734_s29 = smov [#allocation7]  }
  0xbc   : > { %p642_p6 = scmp.ne.s32.totalorder %s398_s16, %s641_s25  ;;  %s645_s6 = sshll.u32 %s734_s29, 4  ;;  %s646_s6 = int_to_ptr.vmem [resolvable:$false] %s645_s6 }
  0xbd   : > { %s647_s15 = scalar_lea.vmem %s646_s6, 256  ;;  %p648_p13 = scmp.lt.s32.totalorder %s398_s16, %s646_s6 }
  0xbe   : > { %p643_p7 = pnand %p642_p6, %p801_p9  ;;  %p649_p1 = scmp.lt.s32.totalorder %s647_s15, %s641_s25 }
  0xc0   : > { %p644_p10 = pneg %p643_p7  ;;  %p650_p2 = por %p649_p1, %p648_p13 }
  0xc2   : > { %p651_p11 = pnand %p650_p2, %p644_p10 }
  0xc4   : > { %654 = shalt.err (!%p651_p11)
}
  0xc5   : > { %s655_s12 = scalar_lea.hbm %s395_s8, 128  ;;  %s659_s20 = scalar_lea.hbm %s1001_s2, 256 }
  0xc6   : > { %p656_p12 = scmp.ne.s32.totalorder %s395_s8, %s655_s12  ;;  %p660_p5 = scmp.lt.s32.totalorder %s395_s8, %s1001_s2 }
  0xc7   : > { %p661_p8 = scmp.lt.s32.totalorder %s659_s20, %s655_s12 }
  0xc8   : > { %p657_p0 = pnand %p656_p12, %p801_p9 }
  0xc9   : > { %p662_p4 = por %p661_p8, %p660_p5 }
  0xca   : > { %p658_p3 = pneg %p657_p0 }
  0xcc   : > { %p663_p6 = pnand %p662_p4, %p658_p3 }
  0xce   : > { %666 = shalt.err (!%p663_p6)
}
  0xcf   : > { %529 = dma.vmem_to_hbm [thread:$0]  (%p801_p9), %s398_s16, 128, %s395_s8, %s384_s18  }
  0xd0 PF: > { %s409_s27 = sand.u32 1, %s705_s9   ;;  %p1007_p7 = scmp.ne.s32.totalorder %s1006_s24, 0 }
  0xd1   : > { %p1008_p10 = scmp.ge.s32.totalorder %s725_s14, 2  ;;  %s410_s30 = scalar_lea.sflag [#allocation4], %s409_s27 }
  0xd3   : > { %p532_p13 = pnand %p1008_p10, %p1007_p7 }
  0xd5   : > { %p533_p1 = pneg %p532_p13 }
  0xd7   : > { %700 = dma.done.wait (%p533_p1), %s410_s30, 128  }
  0xd8   : > { %702 = vsyncadd (%p533_p1), %s410_s30, 4294967168  ;;  %s21_s14 = sadd.s32 1, %s725_s14   ;;  %s1009_s9 = smov %s709_s10 }
  0xd9   : > { %p18_p2 = scmp.ge.s32.totalorder %s21_s14, 4   ;;  %s1010_s10 = smov %s713_s11 }
  0xda   : > { %s1011_s11 = smov %s806_s23  ;;  %s1012_s12 = smov %s721_s13 }
  0xdb   : > { %s1013_s13 = smov %s1015_s17  ;;  %20 = sbr.rel (!%p18_p2) target bundleno = 8 (0x8), region = 98 }
  0xe0   :  { %415 = vsyncpa [#allocation3], 1 }
  0xe1   :  { %417 = vsyncpa [#allocation3 + $0x1], 1 }
  0xe2   :  { %418 = vsyncpa [#allocation6], 1 }
  0xe3   :  { %420 = vsyncpa [#allocation6 + $0x1], 1 }
  0xe4   :  { %421 = vsyncpa [#allocation4], 1 }
  0xe5   :  { %423 = vsyncpa [#allocation4 + $0x1], 1 }

</bundles_post_ra>
